<compile_context>
chip_gen: v5e
topology: v5e:2x2
jax: 0.10.0
libtpu: 0.0.40
codegen_flags: <defaults>
</compile_context>

<pallas_src>
import jax
import jax.numpy as jnp
from jax import lax
from jax.experimental import pallas as pl
from jax.experimental.pallas import tpu as pltpu


_GATHER_NSEM = 8  # depth of the in-flight DMA window for the row-gather path


def _round_up(x, m):
    return ((x + m - 1) // m) * m


# ---------------------------------------------------------------------------
# Path 1: tiny vocab (V <= 128) — one-hot x table matmul on the MXU.
# ---------------------------------------------------------------------------
def _onehot_embed_kernel(labels_ref, table_ref, out_ref):
    # labels_ref: (TB, 1) int32; table_ref: (V, H); out_ref: (TB, H)
    labels = labels_ref[...]                                  # (TB, 1)
    tb = out_ref.shape[0]
    v = table_ref.shape[0]
    col_ids = lax.broadcasted_iota(jnp.int32, (tb, v), 1)
    onehot = (col_ids == labels).astype(table_ref.dtype)      # (TB, V)
    out_ref[...] = jnp.dot(
        onehot, table_ref[...], preferred_element_type=jnp.float32
    ).astype(out_ref.dtype)


def _embed_onehot(eff_labels, table, block_b):
    b_pad = eff_labels.shape[0]
    v, h = table.shape
    itemsize = table.dtype.itemsize
    cost = pl.CostEstimate(
        flops=2 * b_pad * v * h,
        transcendentals=0,
        bytes_accessed=b_pad * 4 + v * h * itemsize + b_pad * h * itemsize,
    )
    return pl.pallas_call(
        _onehot_embed_kernel,
        out_shape=jax.ShapeDtypeStruct((b_pad, h), table.dtype),
        grid=(b_pad // block_b,),
        in_specs=[
            pl.BlockSpec((block_b, 1), lambda i: (i, 0)),   # labels tile
            pl.BlockSpec((v, h), lambda i: (0, 0)),         # full (tiny) table
        ],
        out_specs=pl.BlockSpec((block_b, h), lambda i: (i, 0)),
        compiler_params=pltpu.CompilerParams(dimension_semantics=("parallel",)),
        cost_estimate=cost,
    )(eff_labels.reshape(b_pad, 1), table)


# ---------------------------------------------------------------------------
# Path 2: real vocab (V > 128) — scalar-prefetched DMA row gather from HBM.
# ---------------------------------------------------------------------------
def _gather_embed_kernel(labels_smem, table_hbm, out_ref, copy_sems):
    # labels_smem: (B_pad,) int32 in SMEM (scalar-prefetched)
    # table_hbm:   (V, H) left in HBM (memory_space=pl.ANY)
    # out_ref:     (TB, H) VMEM output block — DMA'd into directly.
    tb = out_ref.shape[0]
    base = pl.program_id(0) * tb

    def row_copy(r):
        lbl = labels_smem[base + r]
        return pltpu.make_async_copy(
            table_hbm.at[lbl], out_ref.at[r], copy_sems.at[r % _GATHER_NSEM]
        )

    # Prime the rolling DMA window (static unroll, at most _GATHER_NSEM copies).
    for r in range(min(_GATHER_NSEM, tb)):
        row_copy(r).start()

    def body(r, carry):
        row_copy(r).wait()

        @pl.when(r + _GATHER_NSEM < tb)
        def _():
            row_copy(r + _GATHER_NSEM).start()

        return carry

    lax.fori_loop(0, tb, body, 0)


def _embed_gather(eff_labels, table, block_b):
    b_pad = eff_labels.shape[0]
    v, h = table.shape
    itemsize = table.dtype.itemsize
    cost = pl.CostEstimate(
        flops=0,
        transcendentals=0,
        bytes_accessed=b_pad * 4 + 2 * b_pad * h * itemsize,
    )
    return pl.pallas_call(
        _gather_embed_kernel,
        out_shape=jax.ShapeDtypeStruct((b_pad, h), table.dtype),
        grid_spec=pltpu.PrefetchScalarGridSpec(
            num_scalar_prefetch=1,                 # labels -> SMEM
            grid=(b_pad // block_b,),
            in_specs=[pl.BlockSpec(memory_space=pl.ANY)],   # table stays in HBM
            out_specs=pl.BlockSpec((block_b, h), lambda i, labels: (i, 0)),
            scratch_shapes=[pltpu.SemaphoreType.DMA((_GATHER_NSEM,))],
        ),
        compiler_params=pltpu.CompilerParams(dimension_semantics=("parallel",)),
        cost_estimate=cost,
    )(eff_labels, table)


# ---------------------------------------------------------------------------
# Wrapper with the LabelEmbedder.forward semantics.
# ---------------------------------------------------------------------------
def label_embedder_forward(
    labels,                # (B,) integer class labels
    embedding_table,       # (num_classes + use_cfg_embedding, H)
    num_classes,
    dropout_prob,
    train,
    force_drop_ids=None,   # optional (B,) array; 1 => drop label (CFG null token)
    rng_key=None,          # required when train=True and dropout_prob > 0
    block_b=None,          # batch tile; default 128 (256 for large B)
):
    b = labels.shape[0]
    v, h = embedding_table.shape

    labels = labels.astype(jnp.int32)

    # --- token_drop: host-side glue (RNG + one fused where) — no extra kernel input ---
    use_dropout = dropout_prob > 0
    if (train and use_dropout) or (force_drop_ids is not None):
        if force_drop_ids is None:
            if rng_key is None:
                raise ValueError(
                    "rng_key is required when train=True and dropout_prob > 0"
                )
            drop_ids = jax.random.uniform(rng_key, (b,)) < dropout_prob
        else:
            drop_ids = force_drop_ids == 1
        labels = jnp.where(drop_ids, num_classes, labels)

    # TODO(synk): nn.Embedding raises on out-of-range indices; we clamp instead so a
    # bad label can never trigger an out-of-bounds HBM DMA in the gather path.
    eff = jnp.clip(labels, 0, v - 1).astype(jnp.int32)

    # --- batch tiling: large MXU/lane-friendly tiles, clamped to the 8-aligned batch ---
    if block_b is None:
        block_b = 256 if b >= 512 else 128  # >=2 grid steps at realistic B (v7x megacore)
    block_b = min(block_b, _round_up(b, 8))
    b_pad = _round_up(b, block_b)
    if b_pad != b:
        eff = jnp.pad(eff, (0, b_pad - b))  # padded rows gather row 0; sliced off below

    if v <= 128:
        out = _embed_onehot(eff, embedding_table, block_b)
    else:
        out = _embed_gather(eff, embedding_table, block_b)
    return out[:b]


if __name__ == "__main__":
    key = jax.random.PRNGKey(0)
    k_tab1, k_lab1, k_drop, k_tab2, k_lab2 = jax.random.split(key, 5)

    hidden_size = 128
    dropout_prob = 0.1

    # ---- Test 1: toy config (V = 11 <= 128  ->  one-hot MXU path) ----
    num_classes = 10
    vocab = num_classes + 1  # extra row for the CFG "null" label
    table = jax.random.normal(k_tab1, (vocab, hidden_size), dtype=jnp.float32)
    B = 8
    labels = jax.random.randint(k_lab1, (B,), 0, num_classes, dtype=jnp.int32)
    force_drop_ids = jnp.array([0, 1, 0, 0, 1, 0, 0, 0], dtype=jnp.int32)

    out = label_embedder_forward(
        labels, table, num_classes=num_classes, dropout_prob=dropout_prob,
        train=True, force_drop_ids=force_drop_ids, rng_key=k_drop)
    out = jax.block_until_ready(out)

    eff_ref = jnp.where(force_drop_ids == 1, num_classes, labels)
    ref = table[eff_ref]
    assert out.shape == (B, hidden_size), out.shape
    assert jnp.allclose(out, ref, atol=1e-5, rtol=1e-5), "one-hot path mismatch"

    # ---- Test 2: larger vocab (V = 201 > 128 -> scalar-prefetched DMA row gather) ----
    num_classes2 = 200
    vocab2 = num_classes2 + 1
    table2 = jax.random.normal(k_tab2, (vocab2, hidden_size), dtype=jnp.float32)
    B2 = 16
    labels2 = jax.random.randint(k_lab2, (B2,), 0, num_classes2, dtype=jnp.int32)

    out2 = label_embedder_forward(
        labels2, table2, num_classes=num_classes2, dropout_prob=dropout_prob,
        train=False)  # eval: no label dropout
    out2 = jax.block_until_ready(out2)

    ref2 = table2[labels2]
    assert out2.shape == (B2, hidden_size), out2.shape
    assert jnp.allclose(out2, ref2), "gather path mismatch"

    print("KERNEL_OK")
</pallas_src>

<mosaic_0001>
module attributes {stable_mosaic.version = 11 : i64} {
  func.func @_onehot_embed_kernel(%arg0: i32, %arg1: memref<8x1xi32, #tpu.memory_space<vmem>>, %arg2: memref<11x128xf32, #tpu.memory_space<vmem>>, %arg3: memref<8x128xf32, #tpu.memory_space<vmem>>) attributes {dimension_semantics = [#tpu.dimension_semantics<parallel>], iteration_bounds = array<i64: 1>, scalar_prefetch = 0 : i64, scratch_operands = 0 : i64, tpu.core_type = #tpu.core_type<tc>, window_params = [{transform_indices = @transform_0, window_bounds = array<i64: 8, 1>}, {pipeline_mode = #tpu.pipeline_mode<synchronous>, transform_indices = @transform_1, window_bounds = array<i64: 11, 128>}, {transform_indices = @transform_2, window_bounds = array<i64: 8, 128>}]} {
    %c0 = arith.constant 0 : index
    %c0_0 = arith.constant 0 : index
    %0 = vector.load %arg1[%c0, %c0_0] : memref<8x1xi32, #tpu.memory_space<vmem>>, vector<8x1xi32>
    %1 = tpu.iota {dimensions = array<i32: 1>} : vector<8x11xi32>
    %2 = vector.broadcast %0 : vector<8x1xi32> to vector<8x11xi32>
    %3 = arith.cmpi eq, %1, %2 : vector<8x11xi32>
    %4 = arith.extui %3 : vector<8x11xi1> to vector<8x11xi32>
    %5 = arith.sitofp %4 : vector<8x11xi32> to vector<8x11xf32>
    %c0_1 = arith.constant 0 : index
    %c0_2 = arith.constant 0 : index
    %6 = vector.load %arg2[%c0_1, %c0_2] : memref<11x128xf32, #tpu.memory_space<vmem>>, vector<11x128xf32>
    %cst = arith.constant dense<0.000000e+00> : vector<8x128xf32>
    %7 = tpu.matmul %5, %6, %cst {dimension_numbers = #tpu.dot_dimension_numbers<[1], [0], [0], [1], [0, 0, 1, 1], [], []>} : vector<8x11xf32>, vector<11x128xf32>, vector<8x128xf32> -> vector<8x128xf32>
    %c0_3 = arith.constant 0 : index
    %c0_4 = arith.constant 0 : index
    %8 = vector.load %arg3[%c0_3, %c0_4] : memref<8x128xf32, #tpu.memory_space<vmem>>, vector<8x128xf32>
    tpu.vector_store %arg3[%c0_3, %c0_4], %7 {strides = array<i32>} : memref<8x128xf32, #tpu.memory_space<vmem>>, vector<8x128xf32>,
    return
  }
  func.func @transform_0(%arg0: i32) -> (i32, i32) {
    %c0_i32 = arith.constant 0 : i32
    %c0_i32_0 = arith.constant 0 : i32
    return %arg0, %c0_i32 : i32, i32
  }
  func.func @transform_1(%arg0: i32) -> (i32, i32) {
    %c0_i32 = arith.constant 0 : i32
    %c0_i32_0 = arith.constant 0 : i32
    %c0_i32_1 = arith.constant 0 : i32
    return %c0_i32, %c0_i32_0 : i32, i32
  }
  func.func @transform_2(%arg0: i32) -> (i32, i32) {
    %c0_i32 = arith.constant 0 : i32
    %c0_i32_0 = arith.constant 0 : i32
    return %arg0, %c0_i32 : i32, i32
  }
}

</mosaic_0001>

<bundles_post_ra>
// kernel: tpu_custom_call.1
= control target key start
LH: loop header
LB: loop body
LE: loop exit
PB: predicated region body
PF: predicated region fallthrough
CT: control target
= control target key end

     0   :  { %7 = vsyncpa [#allocation3], 0  ;;  %s177_s0 = inlined_call_operand.vmem [shape: s32[8,1], index: 0, kind: input, shape index: {}]   ;;  %s178_s1 = inlined_call_operand.hbm [shape: f32[11,128], index: 1, kind: input, shape index: {}]   ;;  %s179_s2 = inlined_call_operand.hbm [shape: f32[8,128], index: 2, kind: output, shape index: {}]  }
   0x1   :  { %8 = vsyncpa [#allocation4], 0  ;;  %s15_s11 = sshll.u32 %s178_s1, 4  ;;  %s147_s12 = smov [#allocation2]   ;;  %s16_s11 = int_to_ptr.hbm [resolvable:$true] %s15_s11 }
   0x2   :  { %s17_s13 = sshll.u32 %s147_s12, 4  ;;  %s148_s14 = smov 128   ;;  %s18_s13 = int_to_ptr.vmem [resolvable:$true] %s17_s13 }
   0x3   :  { %s149_s15 = smov 8  }
   0x4   :  { %23 = dma.hbm_to_vmem [thread:$0]  %s16_s11, 256, %s18_s13, [#allocation3], %s148_s14, %s148_s14, %s149_s15  }
   0x5   :  { %143 = dma.done.wait [#allocation3], 256  }
   0x6   :  { %144 = vsyncadd [#allocation3], 4294967040  ;;  %v150_v0 = vmov 0   ;;  %vm43_vm0 = vcmask 1042432   ;;  %v28_v1 = vld [vmem:[%s177_s0] sm:$0xff]  ;;  %v29_v4 = vlaneseq  ;;  %vm39_vm1 = vcmask 89088  }
   0x7   :  { %94 = vset.pattern.permute.xlu0 %v150_v0  ;;  %v38_v2 = vld [vmem:[#allocation2 + $0x8] sm:$0x7]  ;;  %v37_v3 = vld [vmem:[#allocation2] sm:$0xff]  ;;  %v151_v7 = vmov 0.0   ;;  %s152_s1 = smov [#allocation5]   ;;  %s75_s21 = sshll.u32 %s179_s2, 4  ;;  %s76_s21 = int_to_ptr.hbm [resolvable:$true] %s75_s21 }
   0x8   :  { %32 = vperm.xlu0 %94, %v28_v1   ;;  %86 = vmatpush.msk.msra.mxu0 %vm43_vm0, %v38_v2  ;;  %v30_v5 = vand.u32 127, %v29_v4  ;;  %s73_s18 = sshll.u32 %s152_s1, 4  ;;  %s74_s18 = int_to_ptr.vmem [resolvable:$true] %s73_s18 }
   0xa   :  { %62 = vmatpush.msra.mxu0 %v37_v3 }
  0x7a   :  { %v33_v6 = vpop.permute.xlu0 %32 }
  0x7b   :  { %vm34_vm2 = vcmp.eq.s32.totalorder %v30_v5, %v33_v6 }
  0x7c   :  { %v85_v8 = vsel %vm34_vm2, 1.0, %v151_v7 }
  0x7d   :  { %87 = vmatmul.msk.f32.vlgmr.msra.gmra.mxu0 %vm39_vm1, %v85_v8 }
  0xfa   :  { %v64_v9 = vpop.f32.mrf.mxu0 }
  0xfb   :  { %67 = vst [vmem:[#allocation5] sm:$0xff] %v64_v9 }
  0xfc   :  { %78 = dma.vmem_to_hbm [thread:$0]  %s74_s18, 128, %s76_s21, [#allocation4]  }
  0xfd   :  { %145 = dma.done.wait [#allocation4], 128  }
  0xfe   :  { %146 = vsyncadd [#allocation4], 4294967168 }
  0xff   :  { %83 = vsyncpa [#allocation3], 1 }
 0x100   :  { %84 = vsyncpa [#allocation4], 1 }

</bundles_post_ra>
